<compile_context>
chip_gen: v7x
topology: tpu7x:2x2x1
jax: 0.10.0
libtpu: 0.0.40
codegen_flags: <defaults>
</compile_context>

<pallas_src>
import math

import jax
import jax.numpy as jnp
from jax.experimental import pallas as pl
from jax.experimental.pallas import tpu as pltpu

_HALF_LOG_2PI = 0.5 * math.log(2.0 * math.pi)


def gmm_log_prob_kernel(xt_ref, nhiv_ref, mu_ref, c_ref, out_ref):
    # xt_ref  : (K, TN)  -- x transposed, batch on lanes
    # nhiv_ref: (K, F)   -- -0.5 / sigma^2
    # mu_ref  : (K, F)   -- means
    # c_ref   : (K, F)   -- -log sigma - 0.5*log(2*pi) + log_softmax(weights)[f]
    # out_ref : (K, TN)  -- log_prob transposed
    x = xt_ref[...]                                  # (K, TN)

    nhiv = nhiv_ref[...][:, :, None]                 # (K, F, 1) — lane broadcast
    mu = mu_ref[...][:, :, None]                     # (K, F, 1)
    c = c_ref[...][:, :, None]                       # (K, F, 1)

    # logits[k, f, n] = -0.5*((x[k,n]-mu[k,f])/sigma[k,f])^2
    #                   - log sigma[k,f] - 0.5*log(2*pi) + log_w[f]
    diff = x[:, None, :] - mu                        # (K, F, TN)   sub
    logits = (diff * diff) * nhiv + c                # (K, F, TN)   mul + fma

    # Numerically stable logsumexp over f (sublane axis -> XLU reduce);
    # exp/log go to the EUP (separate bundle slot).
    m = jnp.max(logits, axis=1, keepdims=True)       # (K, 1, TN)
    s = jnp.sum(jnp.exp(logits - m), axis=1)         # (K, TN)
    out_ref[...] = m[:, 0, :] + jnp.log(s)

    # NOTE: for the last (padded) tile when N % TN != 0 the padded lanes
    # compute on garbage, but Pallas never writes them back — harmless.


def _choose_block_n(N, K, F, requested=None):
    """Pick a lane-aligned batch tile width."""
    if requested is not None:
        bn = requested
    else:
        # Budget ~4 live f32 temps of shape (K, F, bn) plus double-buffered
        # (K, bn) in/out tiles well under the 32 MiB default scoped VMEM
        # (v7x has only 64 MiB physical VMEM).
        budget = 8 * 1024 * 1024
        per_col = 4 * (4 * K * F + 4 * K)
        bn = max(128, min(2048, (budget // per_col) // 128 * 128))
        # Prefer >= 4 grid steps so the "parallel" grid axis can be sharded
        # across the two TensorCores on v7x.
        while bn > 128 and pl.cdiv(N, bn) < 4:
            bn //= 2
    if bn >= N:
        return N                               # single full-extent tile (legal)
    return max(128, (bn // 128) * 128)         # lane-aligned tile, cdiv grid


def gmm_log_prob(x, means, std_devs, weights, *, block_n=None):
    N, feat = x.shape
    K, F = means.shape
    assert K == F == feat, "PyTorch GMMLayer only works when K == F == x.shape[-1]"

    x = x.astype(jnp.float32)
    means = means.astype(jnp.float32)
    std_devs = std_devs.astype(jnp.float32)
    weights = weights.astype(jnp.float32)

    # ---- hoisted, grid-invariant parameter math (runs once, outside kernel) ----
    sigma = jnp.abs(std_devs)                                   # (K, F)
    inv_var = 1.0 / (sigma * sigma)                             # (K, F)
    log_w = jax.nn.log_softmax(weights)                         # (F,)
    neg_half_inv_var = -0.5 * inv_var                           # (K, F)
    c_param = -jnp.log(sigma) - _HALF_LOG_2PI + log_w[None, :]  # (K, F)

    # Batch on lanes: kernel consumes x^T of shape (K, N).
    xt = x.T                                                    # (K, N)

    bn = _choose_block_n(N, K, F, block_n)
    grid = (pl.cdiv(N, bn),)

    out_t = pl.pallas_call(
        gmm_log_prob_kernel,
        out_shape=jax.ShapeDtypeStruct((K, N), jnp.float32),
        grid_spec=pltpu.PrefetchScalarGridSpec(
            num_scalar_prefetch=0,
            grid=grid,
            in_specs=[
                pl.BlockSpec((K, bn), lambda i: (0, i)),   # x^T tile (lane-dense)
                pl.BlockSpec((K, F), lambda i: (0, 0)),    # -0.5/sigma^2 (resident)
                pl.BlockSpec((K, F), lambda i: (0, 0)),    # means        (resident)
                pl.BlockSpec((K, F), lambda i: (0, 0)),    # fused const  (resident)
            ],
            out_specs=pl.BlockSpec((K, bn), lambda i: (0, i)),
        ),
        compiler_params=pltpu.CompilerParams(
            dimension_semantics=("parallel",),
            vmem_limit_bytes=48 * 1024 * 1024,   # headroom even on v7x (64 MiB phys)
        ),
    )(xt, neg_half_inv_var, means, c_param)

    return out_t.T                                              # (N, K)


def gmm_log_prob_ref(x, means, std_devs, weights):
    """Pure-JAX reference matching the PyTorch broadcasting semantics."""
    sigma = jnp.abs(std_devs)
    log_w = jax.nn.log_softmax(weights)
    z = (x[:, :, None] - means[None, :, :]) / sigma[None, :, :]
    log_pdf = -0.5 * z * z - jnp.log(sigma)[None, :, :] - _HALF_LOG_2PI
    return jax.scipy.special.logsumexp(log_pdf + log_w[None, None, :], axis=-1)


if __name__ == "__main__":
    # num_components == num_features is required by the PyTorch module's
    # MixtureSameFamily construction.
    num_components = 8
    num_features = 8
    batch = 512   # 4 lane-dense grid steps of 128 columns each

    key = jax.random.PRNGKey(0)
    k_means, k_std, k_w, k_x = jax.random.split(key, 4)

    # Deterministic "parameters" mirroring the __init__ shapes:
    #   means ~ randn(K, F), std_devs ~ rand(K, F), weights ~ randn(K)
    means = jax.random.normal(k_means, (num_components, num_features), jnp.float32)
    std_devs = jax.random.uniform(k_std, (num_components, num_features), jnp.float32,
                                  minval=0.1, maxval=1.0)
    weights = jax.random.normal(k_w, (num_components,), jnp.float32)

    x = jax.random.normal(k_x, (batch, num_features), jnp.float32)

    out = gmm_log_prob(x, means, std_devs, weights, block_n=128)
    out = jax.block_until_ready(out)

    ref = gmm_log_prob_ref(x, means, std_devs, weights)
    assert out.shape == (batch, num_components)
    # Squared-difference form keeps full f32 precision, so a tight tolerance
    # is fine.
    assert jnp.allclose(out, ref, atol=1e-4, rtol=1e-4), "mismatch vs reference"

    print("KERNEL_OK")
</pallas_src>

<mosaic_0001>
module attributes {stable_mosaic.version = 11 : i64} {
  func.func @gmm_log_prob_kernel(%arg0: i32, %arg1: memref<8x128xf32, #tpu.memory_space<vmem>>, %arg2: memref<8x8xf32, #tpu.memory_space<vmem>>, %arg3: memref<8x8xf32, #tpu.memory_space<vmem>>, %arg4: memref<8x8xf32, #tpu.memory_space<vmem>>, %arg5: memref<8x128xf32, #tpu.memory_space<vmem>>) attributes {dimension_semantics = [#tpu.dimension_semantics<parallel>], iteration_bounds = array<i64: 4>, scalar_prefetch = 0 : i64, scratch_operands = 0 : i64, tpu.core_type = #tpu.core_type<tc>, window_params = [{transform_indices = @transform_0, window_bounds = array<i64: 8, 128>}, {pipeline_mode = #tpu.pipeline_mode<synchronous>, transform_indices = @transform_1, window_bounds = array<i64: 8, 8>}, {pipeline_mode = #tpu.pipeline_mode<synchronous>, transform_indices = @transform_2, window_bounds = array<i64: 8, 8>}, {pipeline_mode = #tpu.pipeline_mode<synchronous>, transform_indices = @transform_3, window_bounds = array<i64: 8, 8>}, {transform_indices = @transform_4, window_bounds = array<i64: 8, 128>}]} {
    %c0 = arith.constant 0 : index
    %c0_0 = arith.constant 0 : index
    %0 = vector.load %arg1[%c0, %c0_0] : memref<8x128xf32, #tpu.memory_space<vmem>>, vector<8x128xf32>
    %c0_1 = arith.constant 0 : index
    %c0_2 = arith.constant 0 : index
    %1 = vector.load %arg2[%c0_1, %c0_2] : memref<8x8xf32, #tpu.memory_space<vmem>>, vector<8x8xf32>
    %2 = vector.shape_cast %1 : vector<8x8xf32> to vector<8x8x1xf32>
    %c0_3 = arith.constant 0 : index
    %c0_4 = arith.constant 0 : index
    %3 = vector.load %arg3[%c0_3, %c0_4] : memref<8x8xf32, #tpu.memory_space<vmem>>, vector<8x8xf32>
    %4 = vector.shape_cast %3 : vector<8x8xf32> to vector<8x8x1xf32>
    %c0_5 = arith.constant 0 : index
    %c0_6 = arith.constant 0 : index
    %5 = vector.load %arg4[%c0_5, %c0_6] : memref<8x8xf32, #tpu.memory_space<vmem>>, vector<8x8xf32>
    %6 = vector.shape_cast %5 : vector<8x8xf32> to vector<8x8x1xf32>
    %7 = vector.shape_cast %0 : vector<8x128xf32> to vector<8x1x128xf32>
    %8 = vector.broadcast %7 : vector<8x1x128xf32> to vector<8x8x128xf32>
    %9 = vector.broadcast %4 : vector<8x8x1xf32> to vector<8x8x128xf32>
    %10 = arith.subf %8, %9 : vector<8x8x128xf32>
    %11 = arith.mulf %10, %10 : vector<8x8x128xf32>
    %12 = vector.broadcast %2 : vector<8x8x1xf32> to vector<8x8x128xf32>
    %13 = arith.mulf %11, %12 : vector<8x8x128xf32>
    %14 = vector.broadcast %6 : vector<8x8x1xf32> to vector<8x8x128xf32>
    %15 = arith.addf %13, %14 : vector<8x8x128xf32>
    %cst = arith.constant dense<0xFF800000> : vector<8x128xf32>
    %16 = vector.multi_reduction <maximumf>, %15, %cst [1] : vector<8x8x128xf32> to vector<8x128xf32>
    %17 = vector.shape_cast %16 : vector<8x128xf32> to vector<8x1x128xf32>
    %18 = vector.broadcast %17 : vector<8x1x128xf32> to vector<8x8x128xf32>
    %19 = arith.subf %15, %18 : vector<8x8x128xf32>
    %20 = math.exp %19 : vector<8x8x128xf32>
    %cst_7 = arith.constant dense<0.000000e+00> : vector<8x128xf32>
    %21 = vector.multi_reduction <add>, %20, %cst_7 [1] : vector<8x8x128xf32> to vector<8x128xf32>
    %22 = vector.shape_cast %17 : vector<8x1x128xf32> to vector<8x128xf32>
    %23 = math.log %21 : vector<8x128xf32>
    %24 = arith.addf %22, %23 : vector<8x128xf32>
    %c0_8 = arith.constant 0 : index
    %c0_9 = arith.constant 0 : index
    %25 = vector.load %arg5[%c0_8, %c0_9] : memref<8x128xf32, #tpu.memory_space<vmem>>, vector<8x128xf32>
    tpu.vector_store %arg5[%c0_8, %c0_9], %24 {strides = array<i32>} : memref<8x128xf32, #tpu.memory_space<vmem>>, vector<8x128xf32>,
    return
  }
  func.func @transform_0(%arg0: i32) -> (i32, i32) {
    %c0_i32 = arith.constant 0 : i32
    %c0_i32_0 = arith.constant 0 : i32
    return %c0_i32, %arg0 : i32, i32
  }
  func.func @transform_1(%arg0: i32) -> (i32, i32) {
    %c0_i32 = arith.constant 0 : i32
    %c0_i32_0 = arith.constant 0 : i32
    %c0_i32_1 = arith.constant 0 : i32
    return %c0_i32, %c0_i32_0 : i32, i32
  }
  func.func @transform_2(%arg0: i32) -> (i32, i32) {
    %c0_i32 = arith.constant 0 : i32
    %c0_i32_0 = arith.constant 0 : i32
    %c0_i32_1 = arith.constant 0 : i32
    return %c0_i32, %c0_i32_0 : i32, i32
  }
  func.func @transform_3(%arg0: i32) -> (i32, i32) {
    %c0_i32 = arith.constant 0 : i32
    %c0_i32_0 = arith.constant 0 : i32
    %c0_i32_1 = arith.constant 0 : i32
    return %c0_i32, %c0_i32_0 : i32, i32
  }
  func.func @transform_4(%arg0: i32) -> (i32, i32) {
    %c0_i32 = arith.constant 0 : i32
    %c0_i32_0 = arith.constant 0 : i32
    return %c0_i32, %arg0 : i32, i32
  }
}

</mosaic_0001>

<bundles_post_ra>
// kernel: tpu_custom_call.1
= control target key start
LH: loop header
LB: loop body
LE: loop exit
PB: predicated region body
PF: predicated region fallthrough
CT: control target
= control target key end

     0   :  { %9 = vsyncpa [#allocation3], 0  ;;  %s1435_s0 = inlined_call_operand.hbm [shape: f32[8,512], index: 0, kind: input, shape index: {}]   ;;  %s1436_s1 = inlined_call_operand.hbm [shape: f32[8,8], index: 1, kind: input, shape index: {}]   ;;  %s1437_s2 = inlined_call_operand.hbm [shape: f32[8,8], index: 2, kind: input, shape index: {}]   ;;  %s1438_s3 = inlined_call_operand.vmem [shape: f32[8,8], index: 3, kind: input, shape index: {}]   ;;  %s1439_s4 = inlined_call_operand.hbm [shape: f32[8,512], index: 4, kind: output, shape index: {}]  }
   0x1   :  { %11 = vsyncpa [#allocation3 + $0x1], 0 }
   0x2   :  { %12 = vsyncpa [#allocation6], 0 }
   0x3   :  { %13 = vsyncpa [#allocation4], 0 }
   0x4   :  { %15 = vsyncpa [#allocation4 + $0x1], 0  ;;  %s1108_s15 = smov 0   ;;  %s1110_s16 = smov 0  }
   0x5   :  { %s1112_s17 = smov 0   ;;  %s1114_s18 = smov 0  }
   0x6 LB: > { %s1129_s19 = sadd.s32 4294967295, %s1076_s18   ;;  %s803_s20 = sadd.s32 4294967294, %s1076_s18   ;;  %s1076_s18 = sphi %s1114_s18, %s1458_s18   ;;  %s1072_s17 = sphi %s1112_s17, %s1457_s17   ;;  %s1068_s16 = sphi %s1110_s16, %s1456_s16   ;;  %s1064_s15 = sphi %s1108_s15, %s1455_s15  }
   0x7   : > { %p41_p0 = scmp.ne.s32.totalorder %s1068_s16, %s1064_s15  ;;  %p1440_p1 = scmp.eq.s32.totalorder %s1129_s19, 0 }
   0x8   : > { %p134_p3 = scmp.eq.s32.totalorder %s803_s20, 3  ;;  %p804_p5 = scmp.ge.s32.totalorder %s1076_s18, 1 }
   0x9   : > { %p1138_p4 = por %p1440_p1, %p41_p0  ;;  %p141_p7 = scmp.lt.s32.totalorder %s1076_s18, 5 }
   0xa   : > { %p1143_p6 = por %p134_p3, %p41_p0  ;;  %s1078_s24 = smov [#allocation5]  }
   0xb   : > { %s1443_s21 = scalar_select %p1138_p4, 1, 0 }
   0xc   : > { %s1444_s22 = scalar_select %p1143_p6, 1, 0 }
   0xd   : > { %p1148_p8 = pnand %p804_p5, %p141_p7  ;;  %s154_s25 = sshll.u32 %s1078_s24, 4  ;;  %s155_s25 = int_to_ptr.vmem [resolvable:$true] %s154_s25 }
   0xe   : > { %s1079_s26 = smov [#allocation7]   ;;  %s1163_s29 = sadd.s32 1, %s1076_s18  }
   0xf   : > { %s1445_s23 = scalar_select %p1148_p8, 1, 0 }
  0x10   : > { %p831_p9 = pneg %p1148_p8  ;;  %s165_s27 = sshll.u32 %s1079_s26, 4  ;;  %s1160_s27 = int_to_ptr.vmem [resolvable:$true] %s165_s27 }
  0x11   : > { %s25_s30 = ssub.s32 %s1076_s18, %s1163_s29  ;;  %s920_s7 = scalar_lea.hbm %s1436_s1, 128 }
  0x12   : > { %p1156_p10 = pnand %p831_p9, %p1440_p1  ;;  %p921_p11 = scmp.ne.s32.totalorder %s1436_s1, %s920_s7 }
  0x13   : > { %p927_p3 = scmp.lt.u32.totalorder %s920_s7, %s1436_s1 }
  0x14   : > { %p922_p12 = pneg %p1156_p10 }
  0x16   : > { %p923_p13 = pnand %p922_p12, %p921_p11 }
  0x18   : > { %p924_p0 = pneg %p923_p13 }
  0x1a   : > { %p929_p5 = pnand %p927_p3, %p924_p0 }
  0x1c   : > { %932 = shalt.err (!%p929_p5)
}
  0x1d   : > { %s933_s12 = scalar_lea.vmem %s155_s25, 128  ;;  %p941_p2 = scmp.lt.s32.totalorder %s155_s25, %s155_s25 }
  0x1e   : > { %p934_p7 = scmp.ne.s32.totalorder %s155_s25, %s933_s12  ;;  %p942_p6 = scmp.lt.s32.totalorder %s933_s12, %s933_s12 }
  0x20   : > { %p936_p9 = pnand %p934_p7, %p922_p12  ;;  %p943_p4 = por %p942_p6, %p941_p2 }
  0x22   : > { %p937_p1 = pneg %p936_p9 }
  0x24   : > { %p944_p8 = pnand %p943_p4, %p937_p1 }
  0x26   : > { %947 = shalt.err (!%p944_p8)
}
  0x27   : > { %834 = dma.hbm_to_vmem [thread:$0]  (!%p1156_p10), %s1436_s1, 128, %s155_s25, [#allocation6]  }
  0x28   : > { %s948_s26 = scalar_lea.hbm %s1437_s2, 128 }
  0x29   : > { %p949_p11 = scmp.ne.s32.totalorder %s1437_s2, %s948_s26  ;;  %p955_p4 = scmp.lt.u32.totalorder %s948_s26, %s1437_s2 }
  0x2b   : > { %p951_p2 = pnand %p949_p11, %p922_p12 }
  0x2d   : > { %p952_p1 = pneg %p951_p2 }
  0x2f   : > { %p957_p6 = pnand %p955_p4, %p952_p1 }
  0x31   : > { %960 = shalt.err (!%p957_p6)
}
  0x32   : > { %s961_s25 = scalar_lea.vmem %s1160_s27, 128  ;;  %p969_p3 = scmp.lt.s32.totalorder %s1160_s27, %s1160_s27 }
  0x33   : > { %p962_p8 = scmp.ne.s32.totalorder %s1160_s27, %s961_s25  ;;  %p970_p5 = scmp.lt.s32.totalorder %s961_s25, %s961_s25 }
  0x35   : > { %p964_p13 = pnand %p962_p8, %p922_p12  ;;  %p971_p7 = por %p970_p5, %p969_p3 }
  0x37   : > { %p965_p0 = pneg %p964_p13 }
  0x39   : > { %p972_p9 = pnand %p971_p7, %p965_p0 }
  0x3b   : > { %975 = shalt.err (!%p972_p9)
}
  0x3c   : > { %837 = dma.hbm_to_vmem [thread:$0]  (!%p1156_p10), %s1437_s2, 128, %s1160_s27, [#allocation6]  }
  0x3d   : > { %p26_p12 = scmp.eq.s32.totalorder %s25_s30, 0  ;;  %s28_s11 = sadd.s32 1, %s1072_s17 }
  0x3e   : > { %p35_p11 = scmp.ne.s32.totalorder %s1072_s17, %s1068_s16  ;;  %p36_p2 = scmp.eq.s32.totalorder %s1076_s18, 0 }
  0x3f   : > { %s1222_s28 = scalar_select %p26_p12, %s1072_s17, %s28_s11  }
  0x40   : > { %p37_p1 = por %p36_p2, %p35_p11  ;;  %p1447_p4 = scmp.eq.s32.totalorder %s1129_s19, 3 }
  0x41   : > { %p848_p8 = scmp.lt.s32.totalorder %s1076_s18, 4  ;;  %s179_s13 = sand.u32 1, %s1072_s17  }
  0x42   : > { %p1226_p6 = por %p1447_p4, %p35_p11  ;;  %s808_s14 = sshll.u32 %s179_s13, 3 }
  0x43   : > { %s809_s20 = sshll.u32 %s1076_s18, 7  ;;  %s183_s30 = scalar_lea.vmem [#allocation2], %s808_s14 }
  0x44   : > { %s1236_s27 = scalar_lea.hbm %s1435_s0, %s809_s20  ;;  %s190_s5 = sshll.u32 %s183_s30, 4  ;;  %s1238_s5 = int_to_ptr.vmem [resolvable:$true] %s190_s5 }
  0x45   : > { %p1240_p10 = pnand %p848_p8, %p37_p1  ;;  %s180_s7 = scalar_lea.sflag [#allocation3], %s179_s13 }
  0x46   : > { %s976_s8 = scalar_lea.hbm %s1236_s27, 128  ;;  %s981_s10 = scalar_lea.hbm %s1435_s0, 512 }
  0x47   : > { %p977_p13 = scmp.ne.s32.totalorder %s1236_s27, %s976_s8  ;;  %p978_p0 = pneg %p1240_p10 }
  0x48   : > { %p982_p7 = scmp.lt.u32.totalorder %s1236_s27, %s1435_s0  ;;  %p983_p9 = scmp.lt.u32.totalorder %s981_s10, %s976_s8 }
  0x49   : > { %p979_p3 = pnand %p978_p0, %p977_p13  ;;  %p985_p11 = scmp.lt.u32.totalorder %s976_s8, %s1236_s27 }
  0x4a   : > { %p984_p12 = por %p983_p9, %p982_p7 }
  0x4b   : > { %p980_p5 = pneg %p979_p3 }
  0x4c   : > { %p986_p2 = por %p985_p11, %p984_p12 }
  0x4e   : > { %p987_p1 = pnand %p986_p2, %p980_p5 }
  0x50   : > { %990 = shalt.err (!%p987_p1)
}
  0x51   : > { %s991_s13 = scalar_lea.vmem %s1238_s5, 128  ;;  %s1080_s20 = smov [#allocation2]  }
  0x52   : > { %p992_p4 = scmp.ne.s32.totalorder %s1238_s5, %s991_s13  ;;  %s996_s24 = sshll.u32 %s1080_s20, 4  ;;  %s997_s24 = int_to_ptr.vmem [resolvable:$false] %s996_s24 }
  0x53   : > { %s998_s26 = scalar_lea.vmem %s997_s24, 256  ;;  %p999_p3 = scmp.lt.s32.totalorder %s1238_s5, %s997_s24 }
  0x54   : > { %p994_p8 = pnand %p992_p4, %p978_p0  ;;  %p1000_p7 = scmp.lt.s32.totalorder %s998_s26, %s991_s13 }
  0x56   : > { %p995_p13 = pneg %p994_p8  ;;  %p1001_p9 = por %p1000_p7, %p999_p3 }
  0x58   : > { %p1002_p12 = pnand %p1001_p9, %p995_p13 }
  0x5a   : > { %1005 = shalt.err (!%p1002_p12)
}
  0x5b   : > { %841 = dma.hbm_to_vmem [thread:$0]  (!%p1240_p10), %s1236_s27, 128, %s1238_s5, %s180_s7  }
  0x5c   : > { %p1450_p5 = scmp.ne.s32.totalorder %s1445_s23, 0 }
  0x5d   : > { %s1272_s30 = sand.u32 (!%p1450_p5), 1, %s1068_s16   ;;  %p1451_p0 = scmp.ne.s32.totalorder (!%p1450_p5), %s1443_s21, 0 }
  0x5e   : > { %199 = sbr.rel (%p1450_p5) target bundleno = 344 (0x158), region = 36  ;;  %s811_s8 = sshll.u32 (!%p1450_p5), %s1272_s30, 3 }
  0x5f   : > { %s202_s25 = scalar_lea.sflag (!%p1450_p5), [#allocation3], %s1272_s30  ;;  %s205_s9 = scalar_lea.vmem (!%p1450_p5), [#allocation2], %s811_s8 }
  0x65   : > { %1051 = dma.done.wait (%p1451_p0), %s202_s25, 128  }
  0x66   : > { %1053 = vsyncadd (%p1451_p0), %s202_s25, 4294967168  ;;  %p1452_p10 = scmp.eq.s32.totalorder %s1129_s19, 0 }
  0x68   : > { %1055 = dma.done.wait (%p1452_p10), [#allocation6], 256   ;;  %p1453_p11 = pmov %p1452_p10 }
  0x69   : > { %v240_v0 = vlaneseq  ;;  %v1081_v2 = vmov 1966171168   ;;  %v296_v9 = vld [vmem:[#allocation7] sm:$0xff]  ;;  %v1297_v16 = vld [vmem:[#allocation5] sm:$0xff]  ;;  %v238_v17 = vld [vmem:[%s205_s9] sm:$0xff]  ;;  %vm684_vm0 = vcmask 1041409  }
  0x6a   : > { %1057 = vsyncadd (%p1453_p11), [#allocation6], 4294967040  ;;  %v413_v3 = vunpack.c.l.s4 %v1081_v2  ;;  %v411_v22 = vcombine.high %v238_v17, %v238_v17  ;;  %v353_v50 = vld [vmem:[%s1438_s3] sm:$0xff]  ;;  %vm686_vm1 = vcmask 1042434   ;;  %vm688_vm2 = vcmask 1043459   ;;  %s816_s27 = sshll.u32 %s1129_s19, 7 }
  0x6b   : > { %v241_v1 = vshrl.u32 %v240_v0, 7  ;;  %vm690_vm3 = vcmask 1044484   ;;  %vm692_vm4 = vcmask 1045509   ;;  %vm694_vm5 = vcmask 1046534   ;;  %s237_s5 = scalar_lea.vmem [#allocation8], %s811_s8  ;;  %s1392_s11 = scalar_lea.hbm %s1439_s4, %s816_s27 }
  0x6c   : > { %v414_v8 = vunpack.c.0.s8 %v413_v3  ;;  %s714_s6 = sshll.u32 %s237_s5, 4  ;;  %vm696_vm6 = vcmask 1047559   ;;  %s701_s19 = scalar_lea.sflag [#allocation4], %s1272_s30  ;;  %s1394_s6 = int_to_ptr.vmem [resolvable:$true] %s714_s6 }
  0x6d   : > { %v1286_v4 = vsub.s32 2, %v241_v1  ;;  %v1288_v5 = vsub.s32 0, %v241_v1  ;;  %v1290_v6 = vsub.s32 3, %v241_v1  ;;  %v249_v7 = vsub.s32 1, %v241_v1  ;;  %s1006_s14 = scalar_lea.vmem %s1394_s6, 128  ;;  %s1082_s13 = smov [#allocation8]  }
  0x6e   : > { %v1294_v12 = vsub.s32 4, %v241_v1  ;;  %v417_v15 = vsub.s32 %v414_v8, %v241_v1  ;;  %v277_v19 = vsub.s32 5, %v241_v1  ;;  %v284_v28 = vsub.s32 6, %v241_v1  ;;  %p1007_p2 = scmp.ne.s32.totalorder %s1394_s6, %s1006_s14  ;;  %s1010_s20 = sshll.u32 %s1082_s13, 4  ;;  %s1011_s20 = int_to_ptr.vmem [resolvable:$false] %s1010_s20 }
  0x6f   : > { %v314_v10 = vrot.slane %v296_v9, %v1286_v4  ;;  %v300_v11 = vrot.slane %v296_v9, %v1288_v5  ;;  %v321_v13 = vrot.slane %v296_v9, %v1290_v6  ;;  %v307_v14 = vrot.slane %v296_v9, %v249_v7  ;;  %s1012_s24 = scalar_lea.vmem %s1011_s20, 256  ;;  %p1013_p8 = scmp.lt.s32.totalorder %s1394_s6, %s1011_s20 }
  0x70   : > { %v328_v18 = vrot.slane %v296_v9, %v1294_v12  ;;  %v243_v20 = vrot.slane %v1297_v16, %v1288_v5  ;;  %v418_v21 = vrot.slane %v238_v17, %v417_v15  ;;  %v425_v25 = vrot.slane %v411_v22, %v417_v15  ;;  %p1008_p1 = pnand %p1007_p2, %p1226_p6  ;;  %p1014_p13 = scmp.lt.s32.totalorder %s1012_s24, %s1006_s14 }
  0x71   : > { %316 = vbcast.lane.b32.xlu1 %v314_v10, 256  ;;  %302 = vbcast.lane.b32.xlu0 %v300_v11, 256  ;;  %v250_v26 = vrot.slane %v1297_v16, %v249_v7  ;;  %v335_v27 = vrot.slane %v296_v9, %v277_v19  ;;  %v257_v40 = vrot.slane %v1297_v16, %v1286_v4  ;;  %v291_v42 = vsub.s32 7, %v241_v1 }
  0x72   : > { %v1302_v23 = vrot.slane %v418_v21, %v417_v15  ;;  %v426_v24 = vcombine.high %v418_v21, %v418_v21  ;;  %v1309_v32 = vrot.slane %v425_v25, %v417_v15  ;;  %v427_v33 = vcombine.high %v425_v25, %v425_v25  ;;  %p1009_p4 = pneg %p1008_p1  ;;  %p1015_p3 = por %p1014_p13, %p1013_p8 }
  0x73   : > { %v342_v41 = vrot.slane %v296_v9, %v284_v28  ;;  %v264_v48 = vrot.slane %v1297_v16, %v1290_v6  ;;  %v349_v49 = vrot.slane %v296_v9, %v291_v42  ;;  %v357_v51 = vrot.slane %v353_v50, %v1288_v5 }
  0x74   : > { %v456_v29 = vcombine.high %v1302_v23, %v1302_v23  ;;  %v463_v30 = vrot.slane %v1302_v23, %v1288_v5  ;;  %v448_v31 = vrot.slane %v426_v24, %v417_v15  ;;  %v479_v37 = vrot.slane %v1309_v32, %v1288_v5  ;;  %p1016_p7 = pnand %p1015_p3, %p1009_p4 }
  0x75   : > { %323 = vbcast.lane.b32.xlu1 %v321_v13, 256  ;;  %309 = vbcast.lane.b32.xlu0 %v307_v14, 256  ;;  %v1315_v38 = vrot.slane %v427_v33, %v417_v15  ;;  %v457_v39 = vcombine.high %v1309_v32, %v1309_v32  ;;  %v364_v52 = vrot.slane %v353_v50, %v249_v7 }
  0x76   : > { %v471_v34 = vrot.slane %v456_v29, %v1288_v5  ;;  %v458_v35 = vcombine.high %v448_v31, %v448_v31  ;;  %v467_v36 = vrot.slane %v448_v31, %v1288_v5  ;;  %v271_v53 = vrot.slane %v1297_v16, %v1294_v12 }
  0x77   : > { %v483_v44 = vrot.slane %v1315_v38, %v1288_v5  ;;  %v1325_v45 = vrot.slane %v457_v39, %v1288_v5  ;;  %v459_v46 = vcombine.high %v1315_v38, %v1315_v38  ;;  %v371_v54 = vrot.slane %v353_v50, %v1286_v4 }
  0x78   : > { %v475_v43 = vrot.slane %v458_v35, %v1288_v5  ;;  %v278_v55 = vrot.slane %v1297_v16, %v277_v19  ;;  %v378_v56 = vrot.slane %v353_v50, %v1290_v6  ;;  %v285_v57 = vrot.slane %v1297_v16, %v284_v28 }
  0x79   : > { %330 = vbcast.lane.b32.xlu0 %v328_v18, 256  ;;  %245 = vbcast.lane.b32.xlu1 %v243_v20, 256  ;;  %v1330_v47 = vrot.slane %v459_v46, %v1288_v5  ;;  %v385_v58 = vrot.slane %v353_v50, %v1294_v12  ;;  %v292_v59 = vrot.slane %v1297_v16, %v291_v42 }
  0x7a   : > { %v392_v60 = vrot.slane %v353_v50, %v277_v19  ;;  %v399_v61 = vrot.slane %v353_v50, %v284_v28  ;;  %v406_v62 = vrot.slane %v353_v50, %v291_v42 }
  0x7d   : > { %252 = vbcast.lane.b32.xlu0 %v250_v26, 256  ;;  %337 = vbcast.lane.b32.xlu1 %v335_v27, 256 }
  0x81   : > { %259 = vbcast.lane.b32.xlu0 %v257_v40, 256  ;;  %344 = vbcast.lane.b32.xlu1 %v342_v41, 256 }
  0x85   : > { %266 = vbcast.lane.b32.xlu0 %v264_v48, 256  ;;  %351 = vbcast.lane.b32.xlu1 %v349_v49, 256 }
  0x89   : > { %359 = vbcast.lane.b32.xlu0 %v357_v51, 256  ;;  %366 = vbcast.lane.b32.xlu1 %v364_v52, 256 }
  0x8d   : > { %273 = vbcast.lane.b32.xlu0 %v271_v53, 256  ;;  %373 = vbcast.lane.b32.xlu1 %v371_v54, 256 }
  0x91   : > { %280 = vbcast.lane.b32.xlu0 %v278_v55, 256  ;;  %380 = vbcast.lane.b32.xlu1 %v378_v56, 256 }
  0x95   : > { %287 = vbcast.lane.b32.xlu0 %v285_v57, 256  ;;  %387 = vbcast.lane.b32.xlu1 %v385_v58, 256 }
  0x99   : > { %294 = vbcast.lane.b32.xlu0 %v292_v59, 256  ;;  %394 = vbcast.lane.b32.xlu1 %v392_v60, 256 }
  0x9d   : > { %401 = vbcast.lane.b32.xlu0 %v399_v61, 256  ;;  %408 = vbcast.lane.b32.xlu1 %v406_v62, 256 }
  0xe3   : > { %v317_v63 = vpop.permute.xlu1 %316  ;;  %v303_v0 = vpop.permute.xlu0 %302 }
  0xe4   : > { %v500_v10 = vsub.f32 %v463_v30, %v303_v0  ;;  %v502_v14 = vsub.f32 %v471_v34, %v317_v63 }
  0xe6   : > { %v508_v15 = vmul.f32 %v500_v10, %v500_v10  ;;  %v510_v21 = vmul.f32 %v502_v14, %v502_v14 }
  0xe7   : > { %v324_v1 = vpop.permute.xlu1 %323  ;;  %v310_v2 = vpop.permute.xlu0 %309 }
  0xe8   : > { %v501_v11 = vsub.f32 %v467_v36, %v310_v2  ;;  %v503_v24 = vsub.f32 %v475_v43, %v324_v1 }
  0xea   : > { %v509_v16 = vmul.f32 %v501_v11, %v501_v11  ;;  %v511_v35 = vmul.f32 %v503_v24, %v503_v24 }
  0xeb   : > { %v331_v3 = vpop.permute.xlu0 %330  ;;  %v246_v4 = vpop.permute.xlu1 %245 }
  0xec   : > { %v516_v17 = vmul.f32 %v508_v15, %v246_v4  ;;  %v504_v34 = vsub.f32 %v479_v37, %v331_v3 }
  0xee   : > { %v512_v50 = vmul.f32 %v504_v34, %v504_v34 }
  0xef   : > { %v253_v6 = vpop.permute.xlu0 %252  ;;  %v338_v7 = vpop.permute.xlu1 %337 }
  0xf0   : > { %v517_v18 = vmul.f32 %v509_v16, %v253_v6  ;;  %v505_v51 = vsub.f32 %v483_v44, %v338_v7 }
  0xf2   : > { %v513_v63 = vmul.f32 %v505_v51, %v505_v51 }
  0xf3   : > { %v260_v8 = vpop.permute.xlu0 %259  ;;  %v345_v9 = vpop.permute.xlu1 %344 }
  0xf4   : > { %v518_v25 = vmul.f32 %v510_v21, %v260_v8  ;;  %v506_v32 = vsub.f32 %v1325_v45, %v345_v9 }
  0xf6   : > { %v514_v45 = vmul.f32 %v506_v32, %v506_v32 }
  0xf7   : > { %v267_v12 = vpop.permute.xlu0 %266  ;;  %v352_v13 = vpop.permute.xlu1 %351 }
  0xf8   : > { %v519_v41 = vmul.f32 %v511_v35, %v267_v12  ;;  %v507_v59 = vsub.f32 %v1330_v47, %v352_v13 }
  0xfa   : > { %v515_v47 = vmul.f32 %v507_v59, %v507_v59 }
  0xfb   : > { %v360_v19 = vpop.permute.xlu0 %359  ;;  %v367_v20 = vpop.permute.xlu1 %366 }
  0xfc   : > { %v524_v22 = vadd.f32 %v516_v17, %v360_v19  ;;  %v525_v23 = vadd.f32 %v517_v18, %v367_v20 }
  0xfe   : > { %v532_v26 = vrot.slane %v524_v22, 4  ;;  %v538_v27 = vrot.slane %v525_v23, 4 }
  0xff   : > { %v274_v28 = vpop.permute.xlu0 %273  ;;  %v374_v29 = vpop.permute.xlu1 %373 }
 0x100   : > { %v533_v30 = vmax.f32 %v524_v22, %v532_v26  ;;  %v539_v31 = vmax.f32 %v525_v23, %v538_v27  ;;  %v526_v33 = vadd.f32 %v518_v25, %v374_v29  ;;  %v520_v37 = vmul.f32 %v512_v50, %v274_v28 }
 0x102   : > { %v534_v36 = vrot.slane %v533_v30, 2  ;;  %v540_v39 = vrot.slane %v539_v31, 2  ;;  %v544_v40 = vrot.slane %v526_v33, 4 }
 0x103   : > { %v281_v42 = vpop.permute.xlu0 %280  ;;  %v381_v46 = vpop.permute.xlu1 %380 }
 0x104   : > { %v535_v43 = vmax.f32 %v533_v30, %v534_v36  ;;  %v541_v48 = vmax.f32 %v539_v31, %v540_v39  ;;  %v545_v49 = vmax.f32 %v526_v33, %v544_v40  ;;  %v527_v52 = vadd.f32 %v519_v41, %v381_v46 }
 0x105   : > { %v521_v2 = vmul.f32 %v513_v63, %v281_v42 }
 0x106   : > { %v536_v53 = vrot.slane %v535_v43, 1  ;;  %v542_v54 = vrot.slane %v541_v48, 1  ;;  %v546_v55 = vrot.slane %v545_v49, 2  ;;  %v550_v56 = vrot.slane %v527_v52, 4 }
 0x107   : > { %v288_v57 = vpop.permute.xlu0 %287  ;;  %v388_v58 = vpop.permute.xlu1 %387 }
 0x108   : > { %v1354_v60 = vmax.f32 %v535_v43, %v536_v53  ;;  %v1356_v61 = vmax.f32 %v541_v48, %v542_v54  ;;  %v547_v62 = vmax.f32 %v545_v49, %v546_v55  ;;  %v551_v5 = vmax.f32 %v527_v52, %v550_v56 }
 0x109   : > { %v528_v38 = vadd.f32 %v520_v37, %v388_v58  ;;  %v522_v15 = vmul.f32 %v514_v45, %v288_v57 }
 0x10a   : > { %v580_v44 = vsub.f32 %v524_v22, %v1354_v60  ;;  %v581_v0 = vsub.f32 %v525_v23, %v1356_v61  ;;  %v548_v1 = vrot.slane %v547_v62, 1  ;;  %v552_v3 = vrot.slane %v551_v5, 2 }
 0x10b   : > { %v556_v4 = vrot.slane %v528_v38, 4  ;;  %v295_v6 = vpop.permute.xlu0 %294  ;;  %v395_v7 = vpop.permute.xlu1 %394 }
 0x10c   : > { %v588_v8 = vmul.f32 1.442695, %v580_v44  ;;  %v590_v9 = vmul.f32 1.442695, %v581_v0  ;;  %v1360_v10 = vmax.f32 %v547_v62, %v548_v1  ;;  %v553_v11 = vmax.f32 %v551_v5, %v552_v3 }
 0x10d   : > { %v557_v12 = vmax.f32 %v528_v38, %v556_v4  ;;  %v529_v13 = vadd.f32 %v521_v2, %v395_v7  ;;  %v523_v16 = vmul.f32 %v515_v47, %v295_v6 }
 0x10e   : > { %888 = vpow2.f32 %v588_v8  ;;  %v582_v14 = vsub.f32 %v526_v33, %v1360_v10  ;;  %v554_v17 = vrot.slane %v553_v11, 1 }
 0x10f   : > { %890 = vpow2.f32 %v590_v9  ;;  %v558_v18 = vrot.slane %v557_v12, 2  ;;  %v562_v19 = vrot.slane %v529_v13, 4  ;;  %v402_v20 = vpop.permute.xlu0 %401  ;;  %v409_v21 = vpop.permute.xlu1 %408 }
 0x110   : > { %v592_v22 = vmul.f32 1.442695, %v582_v14  ;;  %v530_v23 = vadd.f32 %v522_v15, %v402_v20  ;;  %v531_v24 = vadd.f32 %v523_v16, %v409_v21  ;;  %v1363_v25 = vmax.f32 %v553_v11, %v554_v17 }
 0x111   : > { %v559_v26 = vmax.f32 %v557_v12, %v558_v18  ;;  %v563_v27 = vmax.f32 %v529_v13, %v562_v19 }
 0x112   : > { %892 = vpow2.f32 %v592_v22  ;;  %v568_v28 = vrot.slane %v530_v23, 4  ;;  %v574_v29 = vrot.slane %v531_v24, 4  ;;  %v583_v30 = vsub.f32 %v527_v52, %v1363_v25 }
 0x113   : > { %v560_v31 = vrot.slane %v559_v26, 1  ;;  %v564_v33 = vrot.slane %v563_v27, 2 }
 0x114   : > { %v569_v35 = vmax.f32 %v530_v23, %v568_v28  ;;  %v575_v34 = vmax.f32 %v531_v24, %v574_v29  ;;  %v594_v36 = vmul.f32 1.442695, %v583_v30 }
 0x115   : > { %v1366_v39 = vmax.f32 %v559_v26, %v560_v31  ;;  %v565_v40 = vmax.f32 %v563_v27, %v564_v33 }
 0x116   : > { %v570_v41 = vrot.slane %v569_v35, 2  ;;  %v576_v42 = vrot.slane %v575_v34, 2  ;;  %894 = vpow2.f32 %v594_v36 }
 0x117   : > { %v584_v46 = vsub.f32 %v528_v38, %v1366_v39  ;;  %v566_v43 = vrot.slane %v565_v40, 1 }
 0x118   : > { %v889_v48 = vpop.eup %888  ;;  %v571_v49 = vmax.f32 %v569_v35, %v570_v41  ;;  %v577_v50 = vmax.f32 %v575_v34, %v576_v42 }
 0x119   : > { %v891_v51 = vpop.eup %890  ;;  %v604_v53 = vrot.slane %v889_v48, 4  ;;  %v596_v52 = vmul.f32 1.442695, %v584_v46  ;;  %v1369_v54 = vmax.f32 %v565_v40, %v566_v43 }
 0x11a   : > { %v610_v55 = vrot.slane %v891_v51, 4  ;;  %v572_v32 = vrot.slane %v571_v49, 1  ;;  %v578_v37 = vrot.slane %v577_v50, 1 }
 0x11b   : > { %v605_v56 = vadd.f32 %v889_v48, %v604_v53  ;;  %896 = vpow2.f32 %v596_v52  ;;  %v585_v57 = vsub.f32 %v529_v13, %v1369_v54 }
 0x11c   : > { %v893_v58 = vpop.eup %892  ;;  %v611_v59 = vadd.f32 %v891_v51, %v610_v55  ;;  %v1372_v62 = vmax.f32 %v571_v49, %v572_v32  ;;  %v1374_v63 = vmax.f32 %v577_v50, %v578_v37 }
 0x11d   : > { %v606_v5 = vrot.slane %v605_v56, 2  ;;  %v616_v38 = vrot.slane %v893_v58, 4  ;;  %v598_v44 = vmul.f32 1.442695, %v585_v57 }
 0x11e   : > { %v612_v0 = vrot.slane %v611_v59, 2  ;;  %v586_v1 = vsub.f32 %v530_v23, %v1372_v62  ;;  %v587_v45 = vsub.f32 %v531_v24, %v1374_v63 }
 0x11f   : > { %v607_v2 = vadd.f32 %v606_v5, %v605_v56  ;;  %v617_v3 = vadd.f32 %v893_v58, %v616_v38  ;;  %898 = vpow2.f32 %v598_v44 }
 0x120   : > { %v613_v4 = vadd.f32 %v612_v0, %v611_v59  ;;  %v600_v6 = vmul.f32 1.442695, %v586_v1  ;;  %v602_v7 = vmul.f32 1.442695, %v587_v45  ;;  %v895_v47 = vpop.eup %894 }
 0x121   : > { %v608_v8 = vrot.slane %v607_v2, 1  ;;  %v618_v9 = vrot.slane %v617_v3, 2  ;;  %v622_v12 = vrot.slane %v895_v47, 4 }
 0x122   : > { %v614_v11 = vrot.slane %v613_v4, 1  ;;  %900 = vpow2.f32 %v600_v6 }
 0x123   : > { %v609_v13 = vadd.f32 %v608_v8, %v607_v2  ;;  %v619_v14 = vadd.f32 %v618_v9, %v617_v3  ;;  %902 = vpow2.f32 %v602_v7  ;;  %v623_v16 = vadd.f32 %v895_v47, %v622_v12 }
 0x124   : > { %v615_v15 = vadd.f32 %v614_v11, %v613_v4 }
 0x125   : > { %v897_v17 = vpop.eup %896  ;;  %904 = vlog2.f32 %v609_v13  ;;  %v620_v18 = vrot.slane %v619_v14, 1  ;;  %v624_v19 = vrot.slane %v623_v16, 2 }
 0x126   : > { %906 = vlog2.f32 %v615_v15  ;;  %v628_v20 = vrot.slane %v897_v17, 4 }
 0x127   : > { %v621_v21 = vadd.f32 %v620_v18, %v619_v14  ;;  %v625_v22 = vadd.f32 %v624_v19, %v623_v16 }
 0x128   : > { %v629_v23 = vadd.f32 %v897_v17, %v628_v20 }
 0x129   : > { %v899_v24 = vpop.eup %898  ;;  %908 = vlog2.f32 %v621_v21  ;;  %v626_v26 = vrot.slane %v625_v22, 1 }
 0x12a   : > { %v630_v27 = vrot.slane %v629_v23, 2  ;;  %v634_v28 = vrot.slane %v899_v24, 4 }
 0x12b   : > { %v627_v30 = vadd.f32 %v626_v26, %v625_v22 }
 0x12c   : > { %v901_v29 = vpop.eup %900  ;;  %v631_v31 = vadd.f32 %v630_v27, %v629_v23  ;;  %v635_v33 = vadd.f32 %v899_v24, %v634_v28 }
 0x12d   : > { %v903_v35 = vpop.eup %902  ;;  %v640_v34 = vrot.slane %v901_v29, 4  ;;  %910 = vlog2.f32 %v627_v30 }
 0x12e   : > { %v632_v36 = vrot.slane %v631_v31, 1  ;;  %v636_v40 = vrot.slane %v635_v33, 2  ;;  %v646_v41 = vrot.slane %v903_v35, 4 }
 0x12f   : > { %v905_v42 = vpop.eup %904  ;;  %v641_v46 = vadd.f32 %v901_v29, %v640_v34 }
 0x130   : > { %v907_v43 = vpop.eup %906  ;;  %v653_v48 = vmul.f32 0.6931472, %v905_v42  ;;  %v633_v49 = vadd.f32 %v632_v36, %v631_v31  ;;  %v637_v50 = vadd.f32 %v636_v40, %v635_v33  ;;  %v647_v51 = vadd.f32 %v903_v35, %v646_v41 }
 0x131   : > { %v655_v53 = vmul.f32 0.6931472, %v907_v43  ;;  %v642_v52 = vrot.slane %v641_v46, 2 }
 0x132   : > { %v668_v55 = vadd.f32 %v653_v48, %v1354_v60  ;;  %912 = vlog2.f32 %v633_v49  ;;  %v638_v32 = vrot.slane %v637_v50, 1  ;;  %v648_v37 = vrot.slane %v647_v51, 2 }
 0x133   : > { %v909_v56 = vpop.eup %908  ;;  %v669_v57 = vadd.f32 %v655_v53, %v1356_v61  ;;  %v643_v58 = vadd.f32 %v642_v52, %v641_v46 }
 0x134   : > { %v657_v59 = vmul.f32 0.6931472, %v909_v56  ;;  %v639_v5 = vadd.f32 %v638_v32, %v637_v50  ;;  %v649_v38 = vadd.f32 %v648_v37, %v647_v51 }
 0x135   : > { %v685_v44 = vsel %vm684_vm0, %v669_v57, %v668_v55  ;;  %v644_v0 = vrot.slane %v643_v58, 1 }
 0x136   : > { %v670_v1 = vadd.f32 %v657_v59, %v1360_v10  ;;  %914 = vlog2.f32 %v639_v5  ;;  %v650_v45 = vrot.slane %v649_v38, 1 }
 0x137   : > { %v645_v2 = vadd.f32 %v644_v0, %v643_v58  ;;  %v911_v3 = vpop.eup %910 }
 0x138   : > { %v687_v60 = vsel %vm686_vm1, %v670_v1, %v685_v44  ;;  %v651_v4 = vadd.f32 %v650_v45, %v649_v38  ;;  %v659_v6 = vmul.f32 0.6931472, %v911_v3 }
 0x139   : > { %916 = vlog2.f32 %v645_v2 }
 0x13a   : > { %918 = vlog2.f32 %v651_v4  ;;  %v671_v61 = vadd.f32 %v659_v6, %v1363_v25 }
 0x13c   : > { %v913_v7 = vpop.eup %912  ;;  %v689_v47 = vsel %vm688_vm2, %v671_v61, %v687_v60 }
 0x13d   : > { %v661_v8 = vmul.f32 0.6931472, %v913_v7 }
 0x13f   : > { %v672_v10 = vadd.f32 %v661_v8, %v1366_v39 }
 0x140   : > { %v915_v9 = vpop.eup %914 }
 0x141   : > { %v691_v11 = vsel %vm690_vm3, %v672_v10, %v689_v47  ;;  %v663_v12 = vmul.f32 0.6931472, %v915_v9 }
 0x143   : > { %v917_v13 = vpop.eup %916  ;;  %v673_v14 = vadd.f32 %v663_v12, %v1369_v54 }
 0x144   : > { %v919_v15 = vpop.eup %918  ;;  %v665_v16 = vmul.f32 0.6931472, %v917_v13 }
 0x145   : > { %v667_v17 = vmul.f32 0.6931472, %v919_v15  ;;  %v693_v25 = vsel %vm692_vm4, %v673_v14, %v691_v11 }
 0x146   : > { %v674_v39 = vadd.f32 %v665_v16, %v1372_v62 }
 0x147   : > { %v675_v18 = vadd.f32 %v667_v17, %v1374_v63 }
 0x148   : > { %v695_v19 = vsel %vm694_vm5, %v674_v39, %v693_v25 }
 0x149   : > { %v697_v54 = vsel %vm696_vm6, %v675_v18, %v695_v19 }
 0x14a   : > { %699 = vst [vmem:[%s237_s5] sm:$0xff] %v697_v54 }
 0x14b   : > { %1019 = shalt.err (!%p1016_p7)
}
 0x14c   : > { %s1020_s26 = scalar_lea.hbm %s1392_s11, 128  ;;  %s1024_s25 = scalar_lea.hbm %s1439_s4, 512 }
 0x14d   : > { %p1021_p9 = scmp.ne.s32.totalorder %s1392_s11, %s1020_s26  ;;  %p1025_p0 = scmp.lt.u32.totalorder %s1392_s11, %s1439_s4 }
 0x14e   : > { %p1026_p10 = scmp.lt.u32.totalorder %s1024_s25, %s1020_s26  ;;  %p1028_p2 = scmp.lt.u32.totalorder %s1020_s26, %s1392_s11 }
 0x14f   : > { %p1022_p12 = pnand %p1021_p9, %p1226_p6 }
 0x150   : > { %p1027_p11 = por %p1026_p10, %p1025_p0 }
 0x151   : > { %p1023_p5 = pneg %p1022_p12 }
 0x152   : > { %p1029_p1 = por %p1028_p2, %p1027_p11 }
 0x154   : > { %p1030_p4 = pnand %p1029_p1, %p1023_p5 }
 0x156   : > { %1033 = shalt.err (!%p1030_p4)
}
 0x157   : > { %829 = dma.vmem_to_hbm [thread:$0]  (%p1226_p6), %s1394_s6, 128, %s1392_s11, %s701_s19  }
 0x158 PF: > { %p851_p8 = scmp.ge.s32.totalorder %s1076_s18, 2  ;;  %s726_s23 = sand.u32 1, %s1064_s15  }
 0x159   : > { %p1454_p13 = scmp.ne.s32.totalorder %s1444_s22, 0  ;;  %s727_s27 = scalar_lea.sflag [#allocation4], %s726_s23 }
 0x15b   : > { %p843_p3 = pnand %p851_p8, %p1454_p13 }
 0x15d   : > { %1059 = dma.done.wait (!%p843_p3), %s727_s27, 128  }
 0x15e   : > { %1061 = vsyncadd (!%p843_p3), %s727_s27, 4294967168  ;;  %p18_p7 = scmp.ge.s32.totalorder %s1163_s29, 6   ;;  %s1455_s15 = smov %s1068_s16 }
 0x15f   : > { %s1456_s16 = smov %s1072_s17  ;;  %s1457_s17 = smov %s1222_s28 }
 0x160   : > { %s1458_s18 = smov %s1163_s29  ;;  %20 = sbr.rel (!%p18_p7) target bundleno = 6 (0x6), region = 89 }
 0x167   :  { %732 = vsyncpa [#allocation3], 1 }
 0x168   :  { %734 = vsyncpa [#allocation3 + $0x1], 1 }
 0x169   :  { %735 = vsyncpa [#allocation6], 1 }
 0x16a   :  { %736 = vsyncpa [#allocation4], 1 }
 0x16b   :  { %738 = vsyncpa [#allocation4 + $0x1], 1 }

</bundles_post_ra>
